<compile_context>
chip_gen: v7x
topology: tpu7x:2x2x1
jax: 0.10.0
libtpu: 0.0.40
codegen_flags: <defaults>
</compile_context>

<pallas_src>
import functools

import jax
import jax.numpy as jnp
import numpy as np
from jax.experimental import pallas as pl
from jax.experimental.pallas import tpu as pltpu

NUM_LAYERS = 7
KERNEL_SIZE = 2                                   # Conv1d kernel_size
DILATIONS = tuple(2 ** i for i in range(NUM_LAYERS))
RECEPTIVE_FIELD = 1 + (KERNEL_SIZE - 1) * sum(DILATIONS)   # 128 for K=2
HALO = RECEPTIVE_FIELD - 1                                  # 127
LANE = 128
SUBLANE = 8
HALO_BLK = ((HALO + LANE - 1) // LANE) * LANE               # 128 (lane aligned)
DEFAULT_TILE = 512                                          # output lanes / tile


def _round_up(x, m):
    return ((x + m - 1) // m) * m


def wavenet_kernel(w_ref, b_ref, x_ref, halo_ref, o_ref):
    """All 7 dilated conv + ReLU layers for one output time-tile, in VMEM.

    w_ref:    (NUM_LAYERS*K,) f32 SMEM   flattened conv weights
    b_ref:    (NUM_LAYERS,)   f32 SMEM   conv biases
    x_ref:    (B_pad, T)      f32 VMEM   main input tile
    halo_ref: (B_pad, 128)    f32 VMEM   right halo (next 128 input samples)
    o_ref:    (B_pad, T)      f32 VMEM   output tile (lane dense)
    """
    # Fixed-width working buffer: [main tile | halo]  -> (B_pad, T + 128)
    x = jnp.concatenate([x_ref[...], halo_ref[...]], axis=1)
    width = x.shape[1]
    for i in range(NUM_LAYERS):
        d = DILATIONS[i]
        # Hoisted scalar reads -> one broadcast each (JAX won't CSE them).
        acc = x * w_ref[i * KERNEL_SIZE] + b_ref[i]
        for j in range(1, KERNEL_SIZE):
            # tap j needs x[t + j*d]; a positive lane rotate by (width - j*d)
            # gives exactly that for all valid t. Wrapped tail lanes stay in
            # the halo region and are never read by valid output positions.
            shifted = pltpu.roll(x, shift=width - j * d, axis=1)
            acc = acc + shifted * w_ref[i * KERNEL_SIZE + j]
        x = jnp.maximum(acc, 0.0)                  # ReLU
    # First T positions are valid; T % 128 == 0 -> aligned slice, unmasked vst.
    o_ref[...] = x[:, : o_ref.shape[1]]


@functools.partial(jax.jit, static_argnames=("tile",))
def wavenet_encoder(x_bl, weights, biases, *, tile=DEFAULT_TILE):
    """x_bl: (B, L) f32 (PyTorch (B, 1, L) with channel squeezed).

    weights: (NUM_LAYERS, KERNEL_SIZE) f32, biases: (NUM_LAYERS,) f32.
    Returns (B, L - 127) f32.
    """
    B, L = x_bl.shape
    if L < RECEPTIVE_FIELD:
        raise ValueError(f"input length {L} < receptive field {RECEPTIVE_FIELD}")
    L_out = L - HALO

    # Flattened 1-D params -> minimal SMEM padding.
    w_flat = jnp.asarray(weights, jnp.float32).reshape(-1)   # (7*K,)
    b_flat = jnp.asarray(biases, jnp.float32).reshape(-1)    # (7,)

    # Time tile: lane-dense (multiple of 128) and a multiple of the halo block
    # so the halo BlockSpec lands on block boundaries.
    T = _round_up(min(tile, L_out), HALO_BLK)
    L_out_pad = _round_up(L_out, T)
    num_tiles = L_out_pad // T
    L_pad = L_out_pad + HALO_BLK                  # zero-padded tail (discarded)

    # Full sublane occupancy: pad batch to a multiple of 8.
    B_pad = _round_up(B, SUBLANE)
    x_pad = jnp.pad(x_bl.astype(jnp.float32),
                    ((0, B_pad - B), (0, L_pad - L)))

    halo_blocks_per_tile = T // HALO_BLK

    out = pl.pallas_call(
        wavenet_kernel,
        out_shape=jax.ShapeDtypeStruct((B_pad, L_out_pad), jnp.float32),
        grid=(num_tiles,),
        in_specs=[
            pl.BlockSpec(memory_space=pltpu.SMEM),            # weights (7K,)
            pl.BlockSpec(memory_space=pltpu.SMEM),            # biases  (7,)
            pl.BlockSpec((B_pad, T), lambda g: (0, g)),       # main time tile
            pl.BlockSpec((B_pad, HALO_BLK),                   # right halo
                         lambda g: (0, (g + 1) * halo_blocks_per_tile)),
        ],
        out_specs=pl.BlockSpec((B_pad, T), lambda g: (0, g)),
        compiler_params=pltpu.CompilerParams(
            dimension_semantics=("parallel",)),               # v7x: 2 TCs
    )(w_flat, b_flat, x_pad, x_pad)                           # same array: tile + halo

    return out[:B, :L_out]


def wavenet_encoder_ref(x_bl, weights, biases):
    """Pure-JAX reference with identical semantics."""
    x = x_bl.astype(jnp.float32)
    w = jnp.asarray(weights, jnp.float32).reshape(NUM_LAYERS, KERNEL_SIZE)
    for i in range(NUM_LAYERS):
        d = DILATIONS[i]
        l_out = x.shape[1] - d * (KERNEL_SIZE - 1)
        acc = x[:, :l_out] * w[i, 0] + biases[i]
        for j in range(1, KERNEL_SIZE):
            acc = acc + x[:, j * d: j * d + l_out] * w[i, j]
        x = jnp.maximum(acc, 0.0)
    return x


if __name__ == "__main__":
    key = jax.random.PRNGKey(0)
    k_x, k_w, k_b = jax.random.split(key, 3)

    # PyTorch input layout is (B, C=1, L); squeeze the singleton channel.
    B, L = 8, 1200                     # 8 -> full sublane occupancy; L_out=1073
    x_ncl = jax.random.normal(k_x, (B, 1, L), dtype=jnp.float32)
    x_bl = x_ncl[:, 0, :]

    # Conv1d(1, 1, K) init bounds: U(-1/sqrt(K), 1/sqrt(K))
    bound = 1.0 / np.sqrt(1 * KERNEL_SIZE)
    weights = jax.random.uniform(k_w, (NUM_LAYERS, KERNEL_SIZE), jnp.float32,
                                 minval=-bound, maxval=bound)
    biases = jax.random.uniform(k_b, (NUM_LAYERS,), jnp.float32,
                                minval=-bound, maxval=bound)

    out = wavenet_encoder(x_bl, weights, biases)
    out = jax.block_until_ready(out)

    ref = wavenet_encoder_ref(x_bl, weights, biases)
    np.testing.assert_allclose(np.asarray(out), np.asarray(ref),
                               rtol=1e-5, atol=1e-5)

    # restore PyTorch (N, C=1, L_out) layout
    out_ncl = out[:, None, :]
    assert out_ncl.shape == (B, 1, L - HALO)

    print("KERNEL_OK")
</pallas_src>

<mosaic_0001>
module attributes {stable_mosaic.version = 11 : i64} {
  func.func @wavenet_kernel(%arg0: i32, %arg1: memref<14xf32, #tpu.memory_space<smem>>, %arg2: memref<7xf32, #tpu.memory_space<smem>>, %arg3: memref<8x512xf32, #tpu.memory_space<vmem>>, %arg4: memref<8x128xf32, #tpu.memory_space<vmem>>, %arg5: memref<8x512xf32, #tpu.memory_space<vmem>>) attributes {dimension_semantics = [#tpu.dimension_semantics<parallel>], iteration_bounds = array<i64: 3>, scalar_prefetch = 0 : i64, scratch_operands = 0 : i64, tpu.core_type = #tpu.core_type<tc>, window_params = [{transform_indices = @transform_0, window_bounds = array<i64: 14>}, {transform_indices = @transform_1, window_bounds = array<i64: 7>}, {transform_indices = @transform_2, window_bounds = array<i64: 8, 512>}, {transform_indices = @transform_3, window_bounds = array<i64: 8, 128>}, {transform_indices = @transform_4, window_bounds = array<i64: 8, 512>}]} {
    %c0 = arith.constant 0 : index
    %c0_0 = arith.constant 0 : index
    %0 = vector.load %arg3[%c0, %c0_0] : memref<8x512xf32, #tpu.memory_space<vmem>>, vector<8x512xf32>
    %c0_1 = arith.constant 0 : index
    %c0_2 = arith.constant 0 : index
    %1 = vector.load %arg4[%c0_1, %c0_2] : memref<8x128xf32, #tpu.memory_space<vmem>>, vector<8x128xf32>
    %2 = tpu.concatenate %0, %1 in 1 : vector<8x512xf32>, vector<8x128xf32> -> vector<8x640xf32>
    %c0_3 = arith.constant 0 : index
    %3 = memref.load %arg1[%c0_3] : memref<14xf32, #tpu.memory_space<smem>>
    %4 = vector.broadcast %3 : f32 to vector<8x640xf32>
    %5 = arith.mulf %2, %4 : vector<8x640xf32>
    %c0_4 = arith.constant 0 : index
    %6 = memref.load %arg2[%c0_4] : memref<7xf32, #tpu.memory_space<smem>>
    %7 = vector.broadcast %6 : f32 to vector<8x640xf32>
    %8 = arith.addf %5, %7 : vector<8x640xf32>
    %c639_i32 = arith.constant 639 : i32
    %9 = tpu.dynamic_rotate %2 by %c639_i32 dim 1 : vector<8x640xf32>, i32 -> vector<8x640xf32>
    %c1 = arith.constant 1 : index
    %10 = memref.load %arg1[%c1] : memref<14xf32, #tpu.memory_space<smem>>
    %11 = vector.broadcast %10 : f32 to vector<8x640xf32>
    %12 = arith.mulf %9, %11 : vector<8x640xf32>
    %13 = arith.addf %8, %12 : vector<8x640xf32>
    %cst = arith.constant 0.000000e+00 : f32
    %14 = vector.broadcast %cst : f32 to vector<8x640xf32>
    %15 = arith.maximumf %13, %14 : vector<8x640xf32>
    %c2 = arith.constant 2 : index
    %16 = memref.load %arg1[%c2] : memref<14xf32, #tpu.memory_space<smem>>
    %17 = vector.broadcast %16 : f32 to vector<8x640xf32>
    %18 = arith.mulf %15, %17 : vector<8x640xf32>
    %c1_5 = arith.constant 1 : index
    %19 = memref.load %arg2[%c1_5] : memref<7xf32, #tpu.memory_space<smem>>
    %20 = vector.broadcast %19 : f32 to vector<8x640xf32>
    %21 = arith.addf %18, %20 : vector<8x640xf32>
    %c638_i32 = arith.constant 638 : i32
    %22 = tpu.dynamic_rotate %15 by %c638_i32 dim 1 : vector<8x640xf32>, i32 -> vector<8x640xf32>
    %c3 = arith.constant 3 : index
    %23 = memref.load %arg1[%c3] : memref<14xf32, #tpu.memory_space<smem>>
    %24 = vector.broadcast %23 : f32 to vector<8x640xf32>
    %25 = arith.mulf %22, %24 : vector<8x640xf32>
    %26 = arith.addf %21, %25 : vector<8x640xf32>
    %cst_6 = arith.constant 0.000000e+00 : f32
    %27 = vector.broadcast %cst_6 : f32 to vector<8x640xf32>
    %28 = arith.maximumf %26, %27 : vector<8x640xf32>
    %c4 = arith.constant 4 : index
    %29 = memref.load %arg1[%c4] : memref<14xf32, #tpu.memory_space<smem>>
    %30 = vector.broadcast %29 : f32 to vector<8x640xf32>
    %31 = arith.mulf %28, %30 : vector<8x640xf32>
    %c2_7 = arith.constant 2 : index
    %32 = memref.load %arg2[%c2_7] : memref<7xf32, #tpu.memory_space<smem>>
    %33 = vector.broadcast %32 : f32 to vector<8x640xf32>
    %34 = arith.addf %31, %33 : vector<8x640xf32>
    %c636_i32 = arith.constant 636 : i32
    %35 = tpu.dynamic_rotate %28 by %c636_i32 dim 1 : vector<8x640xf32>, i32 -> vector<8x640xf32>
    %c5 = arith.constant 5 : index
    %36 = memref.load %arg1[%c5] : memref<14xf32, #tpu.memory_space<smem>>
    %37 = vector.broadcast %36 : f32 to vector<8x640xf32>
    %38 = arith.mulf %35, %37 : vector<8x640xf32>
    %39 = arith.addf %34, %38 : vector<8x640xf32>
    %cst_8 = arith.constant 0.000000e+00 : f32
    %40 = vector.broadcast %cst_8 : f32 to vector<8x640xf32>
    %41 = arith.maximumf %39, %40 : vector<8x640xf32>
    %c6 = arith.constant 6 : index
    %42 = memref.load %arg1[%c6] : memref<14xf32, #tpu.memory_space<smem>>
    %43 = vector.broadcast %42 : f32 to vector<8x640xf32>
    %44 = arith.mulf %41, %43 : vector<8x640xf32>
    %c3_9 = arith.constant 3 : index
    %45 = memref.load %arg2[%c3_9] : memref<7xf32, #tpu.memory_space<smem>>
    %46 = vector.broadcast %45 : f32 to vector<8x640xf32>
    %47 = arith.addf %44, %46 : vector<8x640xf32>
    %c632_i32 = arith.constant 632 : i32
    %48 = tpu.dynamic_rotate %41 by %c632_i32 dim 1 : vector<8x640xf32>, i32 -> vector<8x640xf32>
    %c7 = arith.constant 7 : index
    %49 = memref.load %arg1[%c7] : memref<14xf32, #tpu.memory_space<smem>>
    %50 = vector.broadcast %49 : f32 to vector<8x640xf32>
    %51 = arith.mulf %48, %50 : vector<8x640xf32>
    %52 = arith.addf %47, %51 : vector<8x640xf32>
    %cst_10 = arith.constant 0.000000e+00 : f32
    %53 = vector.broadcast %cst_10 : f32 to vector<8x640xf32>
    %54 = arith.maximumf %52, %53 : vector<8x640xf32>
    %c8 = arith.constant 8 : index
    %55 = memref.load %arg1[%c8] : memref<14xf32, #tpu.memory_space<smem>>
    %56 = vector.broadcast %55 : f32 to vector<8x640xf32>
    %57 = arith.mulf %54, %56 : vector<8x640xf32>
    %c4_11 = arith.constant 4 : index
    %58 = memref.load %arg2[%c4_11] : memref<7xf32, #tpu.memory_space<smem>>
    %59 = vector.broadcast %58 : f32 to vector<8x640xf32>
    %60 = arith.addf %57, %59 : vector<8x640xf32>
    %c624_i32 = arith.constant 624 : i32
    %61 = tpu.dynamic_rotate %54 by %c624_i32 dim 1 : vector<8x640xf32>, i32 -> vector<8x640xf32>
    %c9 = arith.constant 9 : index
    %62 = memref.load %arg1[%c9] : memref<14xf32, #tpu.memory_space<smem>>
    %63 = vector.broadcast %62 : f32 to vector<8x640xf32>
    %64 = arith.mulf %61, %63 : vector<8x640xf32>
    %65 = arith.addf %60, %64 : vector<8x640xf32>
    %cst_12 = arith.constant 0.000000e+00 : f32
    %66 = vector.broadcast %cst_12 : f32 to vector<8x640xf32>
    %67 = arith.maximumf %65, %66 : vector<8x640xf32>
    %c10 = arith.constant 10 : index
    %68 = memref.load %arg1[%c10] : memref<14xf32, #tpu.memory_space<smem>>
    %69 = vector.broadcast %68 : f32 to vector<8x640xf32>
    %70 = arith.mulf %67, %69 : vector<8x640xf32>
    %c5_13 = arith.constant 5 : index
    %71 = memref.load %arg2[%c5_13] : memref<7xf32, #tpu.memory_space<smem>>
    %72 = vector.broadcast %71 : f32 to vector<8x640xf32>
    %73 = arith.addf %70, %72 : vector<8x640xf32>
    %c608_i32 = arith.constant 608 : i32
    %74 = tpu.dynamic_rotate %67 by %c608_i32 dim 1 : vector<8x640xf32>, i32 -> vector<8x640xf32>
    %c11 = arith.constant 11 : index
    %75 = memref.load %arg1[%c11] : memref<14xf32, #tpu.memory_space<smem>>
    %76 = vector.broadcast %75 : f32 to vector<8x640xf32>
    %77 = arith.mulf %74, %76 : vector<8x640xf32>
    %78 = arith.addf %73, %77 : vector<8x640xf32>
    %cst_14 = arith.constant 0.000000e+00 : f32
    %79 = vector.broadcast %cst_14 : f32 to vector<8x640xf32>
    %80 = arith.maximumf %78, %79 : vector<8x640xf32>
    %c12 = arith.constant 12 : index
    %81 = memref.load %arg1[%c12] : memref<14xf32, #tpu.memory_space<smem>>
    %82 = vector.broadcast %81 : f32 to vector<8x640xf32>
    %83 = arith.mulf %80, %82 : vector<8x640xf32>
    %c6_15 = arith.constant 6 : index
    %84 = memref.load %arg2[%c6_15] : memref<7xf32, #tpu.memory_space<smem>>
    %85 = vector.broadcast %84 : f32 to vector<8x640xf32>
    %86 = arith.addf %83, %85 : vector<8x640xf32>
    %c576_i32 = arith.constant 576 : i32
    %87 = tpu.dynamic_rotate %80 by %c576_i32 dim 1 : vector<8x640xf32>, i32 -> vector<8x640xf32>
    %c13 = arith.constant 13 : index
    %88 = memref.load %arg1[%c13] : memref<14xf32, #tpu.memory_space<smem>>
    %89 = vector.broadcast %88 : f32 to vector<8x640xf32>
    %90 = arith.mulf %87, %89 : vector<8x640xf32>
    %91 = arith.addf %86, %90 : vector<8x640xf32>
    %cst_16 = arith.constant 0.000000e+00 : f32
    %92 = vector.broadcast %cst_16 : f32 to vector<8x640xf32>
    %93 = arith.maximumf %91, %92 : vector<8x640xf32>
    %94 = vector.extract_strided_slice %93 {offsets = [0, 0], sizes = [8, 512], strides = [1, 1]} : vector<8x640xf32> to vector<8x512xf32>
    %c0_17 = arith.constant 0 : index
    %c0_18 = arith.constant 0 : index
    %95 = vector.load %arg5[%c0_17, %c0_18] : memref<8x512xf32, #tpu.memory_space<vmem>>, vector<8x512xf32>
    tpu.vector_store %arg5[%c0_17, %c0_18], %94 {strides = array<i32>} : memref<8x512xf32, #tpu.memory_space<vmem>>, vector<8x512xf32>,
    return
  }
  func.func @transform_0(%arg0: i32) -> i32 {
    %c0_i32 = arith.constant 0 : i32
    %c0_i32_0 = arith.constant 0 : i32
    return %c0_i32 : i32
  }
  func.func @transform_1(%arg0: i32) -> i32 {
    %c0_i32 = arith.constant 0 : i32
    %c0_i32_0 = arith.constant 0 : i32
    return %c0_i32 : i32
  }
  func.func @transform_2(%arg0: i32) -> (i32, i32) {
    %c0_i32 = arith.constant 0 : i32
    %c0_i32_0 = arith.constant 0 : i32
    return %c0_i32, %arg0 : i32, i32
  }
  func.func @transform_3(%arg0: i32) -> (i32, i32) {
    %c1_i32 = arith.constant 1 : i32
    %0 = arith.addi %arg0, %c1_i32 : i32
    %c4_i32 = arith.constant 4 : i32
    %1 = arith.muli %0, %c4_i32 : i32
    %c0_i32 = arith.constant 0 : i32
    %c0_i32_0 = arith.constant 0 : i32
    return %c0_i32, %1 : i32, i32
  }
  func.func @transform_4(%arg0: i32) -> (i32, i32) {
    %c0_i32 = arith.constant 0 : i32
    %c0_i32_0 = arith.constant 0 : i32
    return %c0_i32, %arg0 : i32, i32
  }
}

</mosaic_0001>

<bundles_post_ra>
// kernel: wavenet_encoder.1
= control target key start
LH: loop header
LB: loop body
LE: loop exit
PB: predicated region body
PF: predicated region fallthrough
CT: control target
= control target key end

     0   :  { %9 = vsyncpa [#allocation3], 0  ;;  %s1009_s0 = inlined_call_operand.vmem [shape: f32[14], index: 0, kind: input, shape index: {}]   ;;  %s1010_s1 = inlined_call_operand.vmem [shape: f32[7], index: 1, kind: input, shape index: {}]   ;;  %s1011_s2 = inlined_call_operand.vmem [shape: f32[8,1664], index: 2, kind: input, shape index: {}, may-alias: {2,3}]   ;;  %s1012_s3 = inlined_call_operand.vmem [shape: f32[8,1664], index: 3, kind: input, shape index: {}, may-alias: {2,3}]   ;;  %s1013_s4 = inlined_call_operand.vmem [shape: f32[8,1536], index: 4, kind: output, shape index: {}]  }
   0x1   :  { %10 = vsyncpa [#allocation5], 0  ;;  %s863_s15 = smov 0  }
   0x2 LB: > { %s703_s16 = sadd.s32 4294967295, %s827_s15   ;;  %p707_p0 = scmp.ge.s32.totalorder %s827_s15, 1  ;;  %s827_s15 = sphi %s863_s15, %s16_s15  }
   0x3   : > { %p145_p1 = scmp.lt.s32.totalorder %s827_s15, 4  ;;  %s158_s19 = sshll.u32 %s1009_s0, 4  ;;  %s159_s19 = int_to_ptr.vmem [resolvable:$true] %s158_s19 }
   0x4   : > { %p880_p3 = scmp.eq.s32.totalorder %s703_s16, 0  ;;  %s169_s24 = sshll.u32 %s1010_s1, 4  ;;  %s170_s24 = int_to_ptr.vmem [resolvable:$true] %s169_s24 }
   0x5   : > { %p874_p2 = pnand %p707_p0, %p145_p1  ;;  %s783_s26 = scalar_lea.vmem %s159_s19, 16 }
   0x6   : > { %s1018_s21 = scalar_select %p880_p3, 1, 0 }
   0x7   : > { %s1017_s20 = scalar_select %p874_p2, 1, 0 }
   0x8   : > { %p755_p4 = pneg %p874_p2  ;;  %p784_p6 = scmp.ne.s32.totalorder %s159_s19, %s783_s26 }
   0x9   : > { %p791_p10 = scmp.lt.s32.totalorder %s159_s19, %s159_s19  ;;  %p792_p11 = scmp.lt.s32.totalorder %s783_s26, %s783_s26 }
   0xa   : > { %p891_p5 = pnand %p880_p3, %p755_p4 }
   0xb   : > { %p793_p12 = por %p792_p11, %p791_p10 }
   0xc   : > { %p785_p7 = pneg %p891_p5 }
   0xe   : > { %p786_p8 = pnand %p785_p7, %p784_p6 }
  0x10   : > { %p787_p9 = pneg %p786_p8 }
  0x12   : > { %p794_p13 = pnand %p793_p12, %p787_p9 }
  0x14   : > { %797 = shalt.err (!%p794_p13)
}
  0x15   : > { %s829_s27 = smov [#allocation2]   ;;  %s798_s28 = scalar_lea.vmem %s170_s24, 16 }
  0x16   : > { %758 = dma.vmem_to_smem (!%p891_p5), %s159_s19, 16, %s829_s27, [#allocation3]  }
  0x17   : > { %p799_p0 = scmp.ne.s32.totalorder %s170_s24, %s798_s28  ;;  %p806_p3 = scmp.lt.s32.totalorder %s170_s24, %s170_s24 }
  0x18   : > { %p807_p2 = scmp.lt.s32.totalorder %s798_s28, %s798_s28 }
  0x19   : > { %p801_p1 = pnand %p799_p0, %p785_p7 }
  0x1a   : > { %p808_p6 = por %p807_p2, %p806_p3 }
  0x1b   : > { %p802_p4 = pneg %p801_p1 }
  0x1d   : > { %p809_p8 = pnand %p808_p6, %p802_p4 }
  0x1f   : > { %812 = shalt.err (!%p809_p8)
}
  0x20   : > { %s830_s29 = smov [#allocation4]   ;;  %p1020_p9 = scmp.ne.s32.totalorder %s1017_s20, 0 }
  0x21   : > { %761 = dma.vmem_to_smem (!%p891_p5), %s170_s24, 16, %s830_s29, [#allocation5]  }
  0x22   : > { %210 = sbr.rel (%p1020_p9) target bundleno = 931 (0x3a3), region = 36  ;;  %p1021_p10 = scmp.ne.s32.totalorder (!%p1020_p9), %s1018_s21, 0 }
  0x29   : > { %818 = dma.done.wait (%p1021_p10), [#allocation3], 16  }
  0x2a   : > { %820 = vsyncadd (%p1021_p10), [#allocation3], 4294967280 }
  0x2b   : > { %822 = dma.done.wait (%p1021_p10), [#allocation5], 16  }
  0x2c   : > { %824 = vsyncadd (%p1021_p10), [#allocation5], 4294967280 }
  0x2d   : > { %220 = sfence }
  0x2e   : > { %s913_s30 = sshll.u32 %s703_s16, 2  ;;  %s831_s11 = smov 127   ;;  %v308_v5 = vlaneseq }
  0x2f   : > { %p256_p2 = scmp.lt.s32.totalorder %s913_s30, 12  ;;  %s746_s5 = sadd.s32 4, %s913_s30 }
  0x30   : > { %p267_p3 = scmp.lt.s32.totalorder %s746_s5, 12  ;;  %s284_s17 = sld [smem:[#allocation2]]  ;;  %v924_v7 = vand.u32 127, %v308_v5 }
  0x31   : > { %s257_s6 = scalar_select %p256_p2, %s913_s30, 12 }
  0x32   : > { %s1023_s5 = smov (!%p267_p3, %s746_s5), 12  ;;  %s291_s18 = sld [smem:[#allocation4]]  ;;  %vm310_vm0 = vcmp.lt.s32.totalorder %v924_v7, 127  ;;  %vm357_vm1 = vcmp.lt.s32.totalorder %v924_v7, 126  ;;  %vm404_vm2 = vcmp.lt.s32.totalorder %v924_v7, 124  ;;  %vm451_vm3 = vcmp.lt.s32.totalorder %v924_v7, 120 }
  0x33   : > { %s715_s7 = sshll.u32 %s257_s6, 3  ;;  %s717_s12 = sshll.u32 %s1023_s5, 3  ;;  %vm498_vm4 = vcmp.lt.s32.totalorder %v924_v7, 112  ;;  %vm545_vm5 = vcmp.lt.s32.totalorder %v924_v7, 96  ;;  %vm590_vm6 = vcmp.lt.s32.totalorder %v924_v7, 64 }
  0x34   : > { %s259_s10 = scalar_lea.vmem %s1011_s2, %s715_s7  ;;  %s270_s16 = scalar_lea.vmem %s1012_s3, %s717_s12 }
  0x35   : > { %v281_v0 = vld [vmem:[%s259_s10 + $0x10] sm:$0xff]  ;;  %v279_v1 = vld [vmem:[%s259_s10] sm:$0xff]  ;;  %v282_v2 = vld [vmem:[%s259_s10 + $0x18] sm:$0xff]  ;;  %s720_s19 = sld [smem:[#allocation2 + $0x1]]  ;;  %s832_s20 = smov 126  }
  0x36   : > { %302 = vrot.lane.b32.xlu1 %v281_v0, %s831_s11  ;;  %298 = vrot.lane.b32.xlu0 %v279_v1, %s831_s11  ;;  %v280_v3 = vld [vmem:[%s259_s10 + $0x8] sm:$0xff]  ;;  %v283_v4 = vld [vmem:[%s270_s16] sm:$0xff]  ;;  %s721_s21 = sld [smem:[#allocation2 + $0x2]]  ;;  %s723_s22 = sld [smem:[#allocation2 + $0x3]] }
  0x37   : > { %v285_v6 = vstv %s284_s17  ;;  %s722_s23 = sld [smem:[#allocation4 + $0x1]]  ;;  %s833_s24 = smov 124  }
  0x38   : > { %v288_v8 = vmul.f32 %v285_v6, %v281_v0  ;;  %v286_v9 = vmul.f32 %v285_v6, %v279_v1  ;;  %v287_v10 = vmul.f32 %v285_v6, %v280_v3  ;;  %v292_v13 = vstv %s291_s18  ;;  %s724_s25 = sld [smem:[#allocation2 + $0x4]]  ;;  %s726_s26 = sld [smem:[#allocation2 + $0x5]] }
  0x39   : > { %v289_v17 = vmul.f32 %v285_v6, %v282_v2  ;;  %v290_v21 = vmul.f32 %v285_v6, %v283_v4  ;;  %s725_s27 = sld [smem:[#allocation4 + $0x2]]  ;;  %s834_s28 = smov 120  }
  0x3a   : > { %304 = vrot.lane.b32.xlu1 %v282_v2, %s831_s11  ;;  %300 = vrot.lane.b32.xlu0 %v280_v3, %s831_s11  ;;  %v295_v15 = vadd.f32 %v292_v13, %v288_v8  ;;  %v293_v16 = vadd.f32 %v292_v13, %v286_v9  ;;  %v294_v18 = vadd.f32 %v292_v13, %v287_v10  ;;  %s727_s29 = sld [smem:[#allocation2 + $0x6]]  ;;  %s729_s5 = sld [smem:[#allocation2 + $0x7]] }
  0x3b   : > { %v317_v14 = vstv %s720_s19  ;;  %v296_v28 = vadd.f32 %v292_v13, %v289_v17  ;;  %v297_v32 = vadd.f32 %v292_v13, %v290_v21  ;;  %s728_s6 = sld [smem:[#allocation4 + $0x3]]  ;;  %s835_s7 = smov 112  }
  0x3c   : > { %v334_v45 = vstv %s721_s21  ;;  %v364_v47 = vstv %s723_s22  ;;  %s730_s8 = sld [smem:[#allocation2 + $0x8]]  ;;  %s732_s9 = sld [smem:[#allocation2 + $0x9]] }
  0x3d   : > { %v341_v48 = vstv %s722_s23  ;;  %s731_s10 = sld [smem:[#allocation4 + $0x4]]  ;;  %s733_s12 = sld [smem:[#allocation2 + $0xa]] }
  0x3e   : > { %306 = vrot.lane.b32.xlu0 %v283_v4, %s831_s11  ;;  %s836_s11 = smov 96   ;;  %s735_s13 = sld [smem:[#allocation2 + $0xb]] }
  0x3f   : > { %s734_s14 = sld [smem:[#allocation4 + $0x5]]  ;;  %s837_s16 = smov 64  }
  0x40   : > { %s736_s17 = sld [smem:[#allocation2 + $0xc]]  ;;  %s737_s18 = sld [smem:[#allocation4 + $0x6]] }
  0x41   : > { %s738_s19 = sld [smem:[#allocation2 + $0xd]]  ;;  %p274_p5 = scmp.lt.s32.totalorder %s913_s30, 11 }
  0x43   : > { %s1025_s30 = smov (!%p274_p5, %s913_s30), 11 }
  0xa8   : > { %v303_v11 = vpop.permute.xlu1 %302  ;;  %v299_v12 = vpop.permute.xlu0 %298 }
  0xac   : > { %v305_v19 = vpop.permute.xlu1 %304  ;;  %v301_v20 = vpop.permute.xlu0 %300 }
  0xad   : > { %v312_v22 = vsel %vm310_vm0, %v303_v11, %v305_v19  ;;  %v313_v23 = vsel %vm310_vm0, %v301_v20, %v303_v11  ;;  %v314_v24 = vsel %vm310_vm0, %v299_v12, %v301_v20  ;;  %v381_v20 = vstv %s724_s25 }
  0xae   : > { %v320_v25 = vmul.f32 %v317_v14, %v312_v22  ;;  %v318_v26 = vmul.f32 %v317_v14, %v314_v24  ;;  %v319_v27 = vmul.f32 %v317_v14, %v313_v23  ;;  %v411_v24 = vstv %s726_s26 }
  0xb0   : > { %v307_v29 = vpop.permute.xlu0 %306  ;;  %v324_v30 = vadd.f32 %v319_v27, %v294_v18  ;;  %v323_v31 = vadd.f32 %v318_v26, %v293_v16  ;;  %v325_v35 = vadd.f32 %v320_v25, %v295_v15  ;;  %v388_v25 = vstv %s725_s27 }
  0xb1   : > { %v311_v33 = vsel %vm310_vm0, %v305_v19, %v307_v29  ;;  %v315_v34 = vsel %vm310_vm0, %v307_v29, %v299_v12 }
  0xb2   : > { %v321_v36 = vmul.f32 %v317_v14, %v311_v33  ;;  %v322_v37 = vmul.f32 %v317_v14, %v315_v34  ;;  %v329_v38 = vmax.f32 %v324_v30, 0.0  ;;  %v328_v39 = vmax.f32 %v323_v31, 0.0 }
  0xb3   : > { %v330_v42 = vmax.f32 %v325_v35, 0.0 }
  0xb4   : > { %349 = vrot.lane.b32.xlu0 %v329_v38, %s832_s20  ;;  %347 = vrot.lane.b32.xlu1 %v328_v39, %s832_s20  ;;  %v326_v40 = vadd.f32 %v321_v36, %v296_v28  ;;  %v327_v43 = vadd.f32 %v322_v37, %v297_v32  ;;  %v335_v46 = vmul.f32 %v334_v45, %v328_v39 }
  0xb5   : > { %v336_v51 = vmul.f32 %v334_v45, %v329_v38  ;;  %v337_v53 = vmul.f32 %v334_v45, %v330_v42 }
  0xb6   : > { %v331_v41 = vmax.f32 %v326_v40, 0.0  ;;  %v332_v44 = vmax.f32 %v327_v43, 0.0  ;;  %v342_v55 = vadd.f32 %v341_v48, %v335_v46 }
  0xb7   : > { %v343_v62 = vadd.f32 %v341_v48, %v336_v51  ;;  %v344_v2 = vadd.f32 %v341_v48, %v337_v53 }
  0xb8   : > { %353 = vrot.lane.b32.xlu0 %v331_v41, %s832_s20  ;;  %351 = vrot.lane.b32.xlu1 %v330_v42, %s832_s20  ;;  %v338_v59 = vmul.f32 %v334_v45, %v331_v41  ;;  %v339_v3 = vmul.f32 %v334_v45, %v332_v44 }
  0xba   : > { %v345_v10 = vadd.f32 %v341_v48, %v338_v59  ;;  %v346_v15 = vadd.f32 %v341_v48, %v339_v3 }
  0xbc   : > { %355 = vrot.lane.b32.xlu1 %v332_v44, %s832_s20  ;;  %s719_s20 = sshll.u32 %s1025_s30, 3 }
  0xbd   : > { %s277_s23 = scalar_lea.vmem %s1013_s4, %s719_s20 }
 0x126   : > { %v350_v49 = vpop.permute.xlu0 %349  ;;  %v348_v50 = vpop.permute.xlu1 %347 }
 0x127   : > { %v361_v52 = vsel %vm357_vm1, %v348_v50, %v350_v49 }
 0x128   : > { %v365_v54 = vmul.f32 %v364_v47, %v361_v52 }
 0x12a   : > { %v354_v56 = vpop.permute.xlu0 %353  ;;  %v352_v57 = vpop.permute.xlu1 %351  ;;  %v370_v58 = vadd.f32 %v365_v54, %v342_v55 }
 0x12b   : > { %v359_v60 = vsel %vm357_vm1, %v352_v57, %v354_v56  ;;  %v360_v61 = vsel %vm357_vm1, %v350_v49, %v352_v57 }
 0x12c   : > { %v366_v63 = vmul.f32 %v364_v47, %v360_v61  ;;  %v367_v0 = vmul.f32 %v364_v47, %v359_v60  ;;  %v375_v1 = vmax.f32 %v370_v58, 0.0  ;;  %v428_v58 = vstv %s727_s29 }
 0x12d   : > { %v458_v61 = vstv %s729_s5 }
 0x12e   : > { %v356_v4 = vpop.permute.xlu1 %355  ;;  %394 = vrot.lane.b32.xlu0 %v375_v1, %s833_s24  ;;  %v371_v5 = vadd.f32 %v366_v63, %v343_v62  ;;  %v372_v6 = vadd.f32 %v367_v0, %v344_v2  ;;  %v382_v22 = vmul.f32 %v381_v20, %v375_v1  ;;  %v435_v62 = vstv %s728_s6 }
 0x12f   : > { %v358_v8 = vsel %vm357_vm1, %v354_v56, %v356_v4  ;;  %v362_v9 = vsel %vm357_vm1, %v356_v4, %v348_v50 }
 0x130   : > { %v368_v11 = vmul.f32 %v364_v47, %v358_v8  ;;  %v369_v12 = vmul.f32 %v364_v47, %v362_v9  ;;  %v376_v13 = vmax.f32 %v371_v5, 0.0  ;;  %v377_v14 = vmax.f32 %v372_v6, 0.0 }
 0x131   : > { %v389_v34 = vadd.f32 %v388_v25, %v382_v22 }
 0x132   : > { %396 = vrot.lane.b32.xlu1 %v376_v13, %s833_s24  ;;  %398 = vrot.lane.b32.xlu0 %v377_v14, %s833_s24  ;;  %v373_v16 = vadd.f32 %v368_v11, %v345_v10  ;;  %v374_v17 = vadd.f32 %v369_v12, %v346_v15  ;;  %v383_v23 = vmul.f32 %v381_v20, %v376_v13 }
 0x133   : > { %v384_v28 = vmul.f32 %v381_v20, %v377_v14 }
 0x134   : > { %v378_v18 = vmax.f32 %v373_v16, 0.0  ;;  %v379_v19 = vmax.f32 %v374_v17, 0.0  ;;  %v390_v33 = vadd.f32 %v388_v25, %v383_v23 }
 0x135   : > { %v391_v42 = vadd.f32 %v388_v25, %v384_v28 }
 0x136   : > { %400 = vrot.lane.b32.xlu1 %v378_v18, %s833_s24  ;;  %402 = vrot.lane.b32.xlu0 %v379_v19, %s833_s24  ;;  %v385_v35 = vmul.f32 %v381_v20, %v378_v18  ;;  %v386_v39 = vmul.f32 %v381_v20, %v379_v19 }
 0x138   : > { %v392_v50 = vadd.f32 %v388_v25, %v385_v35  ;;  %v393_v53 = vadd.f32 %v388_v25, %v386_v39 }
 0x1a0   : > { %v395_v21 = vpop.permute.xlu0 %394 }
 0x1a4   : > { %v397_v26 = vpop.permute.xlu1 %396  ;;  %v399_v27 = vpop.permute.xlu0 %398 }
 0x1a5   : > { %v408_v29 = vsel %vm404_vm2, %v395_v21, %v397_v26  ;;  %v407_v30 = vsel %vm404_vm2, %v397_v26, %v399_v27 }
 0x1a6   : > { %v412_v31 = vmul.f32 %v411_v24, %v408_v29  ;;  %v413_v32 = vmul.f32 %v411_v24, %v407_v30 }
 0x1a8   : > { %v401_v36 = vpop.permute.xlu1 %400  ;;  %v418_v37 = vadd.f32 %v413_v32, %v390_v33  ;;  %v417_v38 = vadd.f32 %v412_v31, %v389_v34  ;;  %v403_v41 = vpop.permute.xlu0 %402  ;;  %v475_v33 = vstv %s730_s8 }
 0x1a9   : > { %v406_v40 = vsel %vm404_vm2, %v399_v27, %v401_v36  ;;  %v405_v44 = vsel %vm404_vm2, %v401_v36, %v403_v41  ;;  %v409_v45 = vsel %vm404_vm2, %v403_v41, %v395_v21 }
 0x1aa   : > { %v414_v43 = vmul.f32 %v411_v24, %v406_v40  ;;  %v423_v46 = vmax.f32 %v418_v37, 0.0  ;;  %v415_v47 = vmul.f32 %v411_v24, %v405_v44  ;;  %v416_v48 = vmul.f32 %v411_v24, %v409_v45 }
 0x1ab   : > { %v422_v49 = vmax.f32 %v417_v38, 0.0  ;;  %v505_v37 = vstv %s732_s9  ;;  %v482_v38 = vstv %s731_s10 }
 0x1ac   : > { %443 = vrot.lane.b32.xlu0 %v423_v46, %s834_s28  ;;  %v419_v51 = vadd.f32 %v414_v43, %v391_v42  ;;  %v420_v52 = vadd.f32 %v415_v47, %v392_v50  ;;  %v421_v56 = vadd.f32 %v416_v48, %v393_v53  ;;  %v430_v0 = vmul.f32 %v428_v58, %v423_v46 }
 0x1ad   : > { %441 = vrot.lane.b32.xlu1 %v422_v49, %s834_s28  ;;  %v429_v59 = vmul.f32 %v428_v58, %v422_v49 }
 0x1ae   : > { %v424_v54 = vmax.f32 %v419_v51, 0.0  ;;  %v425_v55 = vmax.f32 %v420_v52, 0.0  ;;  %v426_v57 = vmax.f32 %v421_v56, 0.0  ;;  %v437_v12 = vadd.f32 %v435_v62, %v430_v0 }
 0x1af   : > { %v436_v4 = vadd.f32 %v435_v62, %v429_v59 }
 0x1b0   : > { %447 = vrot.lane.b32.xlu0 %v425_v55, %s834_s28  ;;  %v431_v2 = vmul.f32 %v428_v58, %v424_v54  ;;  %v432_v9 = vmul.f32 %v428_v58, %v425_v55  ;;  %v433_v17 = vmul.f32 %v428_v58, %v426_v57 }
 0x1b1   : > { %445 = vrot.lane.b32.xlu1 %v424_v54, %s834_s28 }
 0x1b2   : > { %v438_v16 = vadd.f32 %v435_v62, %v431_v2  ;;  %v439_v23 = vadd.f32 %v435_v62, %v432_v9  ;;  %v440_v28 = vadd.f32 %v435_v62, %v433_v17 }
 0x1b5   : > { %449 = vrot.lane.b32.xlu1 %v426_v57, %s834_s28 }
 0x21e   : > { %v444_v60 = vpop.permute.xlu0 %443 }
 0x21f   : > { %v442_v63 = vpop.permute.xlu1 %441 }
 0x220   : > { %v455_v1 = vsel %vm451_vm3, %v442_v63, %v444_v60 }
 0x221   : > { %v459_v3 = vmul.f32 %v458_v61, %v455_v1 }
 0x222   : > { %v448_v5 = vpop.permute.xlu0 %447 }
 0x223   : > { %v446_v6 = vpop.permute.xlu1 %445  ;;  %v464_v8 = vadd.f32 %v459_v3, %v436_v4 }
 0x224   : > { %v453_v10 = vsel %vm451_vm3, %v446_v6, %v448_v5  ;;  %v454_v11 = vsel %vm451_vm3, %v444_v60, %v446_v6 }
 0x225   : > { %v460_v13 = vmul.f32 %v458_v61, %v454_v11  ;;  %v461_v14 = vmul.f32 %v458_v61, %v453_v10  ;;  %v469_v15 = vmax.f32 %v464_v8, 0.0  ;;  %v522_v8 = vstv %s733_s12 }
 0x226   : > { %v552_v11 = vstv %s735_s13 }
 0x227   : > { %v450_v18 = vpop.permute.xlu1 %449  ;;  %488 = vrot.lane.b32.xlu0 %v469_v15, %s835_s7  ;;  %v465_v19 = vadd.f32 %v460_v13, %v437_v12  ;;  %v466_v20 = vadd.f32 %v461_v14, %v438_v16  ;;  %v476_v35 = vmul.f32 %v475_v33, %v469_v15  ;;  %v529_v12 = vstv %s734_s14 }
 0x228   : > { %v452_v21 = vsel %vm451_vm3, %v448_v5, %v450_v18  ;;  %v456_v22 = vsel %vm451_vm3, %v450_v18, %v442_v63 }
 0x229   : > { %v462_v24 = vmul.f32 %v458_v61, %v452_v21  ;;  %v463_v25 = vmul.f32 %v458_v61, %v456_v22  ;;  %v470_v26 = vmax.f32 %v465_v19, 0.0  ;;  %v471_v27 = vmax.f32 %v466_v20, 0.0 }
 0x22a   : > { %v483_v47 = vadd.f32 %v482_v38, %v476_v35 }
 0x22b   : > { %490 = vrot.lane.b32.xlu1 %v470_v26, %s835_s7  ;;  %492 = vrot.lane.b32.xlu0 %v471_v27, %s835_s7  ;;  %v467_v29 = vadd.f32 %v462_v24, %v439_v23  ;;  %v468_v30 = vadd.f32 %v463_v25, %v440_v28  ;;  %v477_v36 = vmul.f32 %v475_v33, %v470_v26 }
 0x22c   : > { %v478_v41 = vmul.f32 %v475_v33, %v471_v27 }
 0x22d   : > { %v472_v31 = vmax.f32 %v467_v29, 0.0  ;;  %v473_v32 = vmax.f32 %v468_v30, 0.0  ;;  %v484_v46 = vadd.f32 %v482_v38, %v477_v36 }
 0x22e   : > { %v485_v55 = vadd.f32 %v482_v38, %v478_v41 }
 0x22f   : > { %494 = vrot.lane.b32.xlu1 %v472_v31, %s835_s7  ;;  %496 = vrot.lane.b32.xlu0 %v473_v32, %s835_s7  ;;  %v479_v48 = vmul.f32 %v475_v33, %v472_v31  ;;  %v480_v52 = vmul.f32 %v475_v33, %v473_v32 }
 0x231   : > { %v486_v63 = vadd.f32 %v482_v38, %v479_v48  ;;  %v487_v2 = vadd.f32 %v482_v38, %v480_v52 }
 0x299   : > { %v489_v34 = vpop.permute.xlu0 %488 }
 0x29d   : > { %v491_v39 = vpop.permute.xlu1 %490  ;;  %v493_v40 = vpop.permute.xlu0 %492 }
 0x29e   : > { %v502_v42 = vsel %vm498_vm4, %v489_v34, %v491_v39  ;;  %v501_v43 = vsel %vm498_vm4, %v491_v39, %v493_v40 }
 0x29f   : > { %v506_v44 = vmul.f32 %v505_v37, %v502_v42  ;;  %v507_v45 = vmul.f32 %v505_v37, %v501_v43 }
 0x2a1   : > { %v495_v49 = vpop.permute.xlu1 %494  ;;  %v512_v50 = vadd.f32 %v507_v45, %v484_v46  ;;  %v511_v51 = vadd.f32 %v506_v44, %v483_v47  ;;  %v497_v54 = vpop.permute.xlu0 %496  ;;  %v569_v46 = vstv %s736_s17 }
 0x2a2   : > { %v500_v53 = vsel %vm498_vm4, %v493_v40, %v495_v49  ;;  %v499_v57 = vsel %vm498_vm4, %v495_v49, %v497_v54  ;;  %v503_v58 = vsel %vm498_vm4, %v497_v54, %v489_v34 }
 0x2a3   : > { %v508_v56 = vmul.f32 %v505_v37, %v500_v53  ;;  %v517_v59 = vmax.f32 %v512_v50, 0.0  ;;  %v509_v60 = vmul.f32 %v505_v37, %v499_v57  ;;  %v510_v61 = vmul.f32 %v505_v37, %v503_v58 }
 0x2a4   : > { %v516_v62 = vmax.f32 %v511_v51, 0.0  ;;  %v575_v50 = vstv %s737_s18  ;;  %v596_v51 = vstv %s738_s19 }
 0x2a5   : > { %537 = vrot.lane.b32.xlu0 %v517_v59, %s836_s11  ;;  %v513_v0 = vadd.f32 %v508_v56, %v485_v55  ;;  %v514_v1 = vadd.f32 %v509_v60, %v486_v63  ;;  %v515_v5 = vadd.f32 %v510_v61, %v487_v2  ;;  %v524_v14 = vmul.f32 %v522_v8, %v517_v59 }
 0x2a6   : > { %535 = vrot.lane.b32.xlu1 %v516_v62, %s836_s11  ;;  %v523_v9 = vmul.f32 %v522_v8, %v516_v62 }
 0x2a7   : > { %v518_v3 = vmax.f32 %v513_v0, 0.0  ;;  %v519_v4 = vmax.f32 %v514_v1, 0.0  ;;  %v520_v6 = vmax.f32 %v515_v5, 0.0  ;;  %v531_v25 = vadd.f32 %v529_v12, %v524_v14 }
 0x2a8   : > { %v530_v18 = vadd.f32 %v529_v12, %v523_v9 }
 0x2a9   : > { %541 = vrot.lane.b32.xlu0 %v519_v4, %s836_s11  ;;  %v525_v16 = vmul.f32 %v522_v8, %v518_v3  ;;  %v526_v22 = vmul.f32 %v522_v8, %v519_v4  ;;  %v527_v30 = vmul.f32 %v522_v8, %v520_v6 }
 0x2aa   : > { %539 = vrot.lane.b32.xlu1 %v518_v3, %s836_s11 }
 0x2ab   : > { %v532_v29 = vadd.f32 %v529_v12, %v525_v16  ;;  %v533_v36 = vadd.f32 %v529_v12, %v526_v22  ;;  %v534_v41 = vadd.f32 %v529_v12, %v527_v30 }
 0x2ae   : > { %543 = vrot.lane.b32.xlu1 %v520_v6, %s836_s11 }
 0x317   : > { %v538_v10 = vpop.permute.xlu0 %537 }
 0x318   : > { %v536_v13 = vpop.permute.xlu1 %535 }
 0x319   : > { %v549_v15 = vsel %vm545_vm5, %v536_v13, %v538_v10 }
 0x31a   : > { %v553_v17 = vmul.f32 %v552_v11, %v549_v15 }
 0x31b   : > { %v542_v19 = vpop.permute.xlu0 %541 }
 0x31c   : > { %v540_v20 = vpop.permute.xlu1 %539  ;;  %v558_v21 = vadd.f32 %v553_v17, %v530_v18 }
 0x31d   : > { %v547_v23 = vsel %vm545_vm5, %v540_v20, %v542_v19  ;;  %v548_v24 = vsel %vm545_vm5, %v538_v10, %v540_v20 }
 0x31e   : > { %v554_v26 = vmul.f32 %v552_v11, %v548_v24  ;;  %v555_v27 = vmul.f32 %v552_v11, %v547_v23  ;;  %v563_v28 = vmax.f32 %v558_v21, 0.0 }
 0x320   : > { %v544_v31 = vpop.permute.xlu1 %543  ;;  %580 = vrot.lane.b32.xlu0 %v563_v28, %s837_s16  ;;  %v559_v32 = vadd.f32 %v554_v26, %v531_v25  ;;  %v560_v33 = vadd.f32 %v555_v27, %v532_v29  ;;  %v570_v48 = vmul.f32 %v569_v46, %v563_v28 }
 0x321   : > { %v546_v34 = vsel %vm545_vm5, %v542_v19, %v544_v31  ;;  %v550_v35 = vsel %vm545_vm5, %v544_v31, %v536_v13 }
 0x322   : > { %v556_v37 = vmul.f32 %v552_v11, %v546_v34  ;;  %v557_v38 = vmul.f32 %v552_v11, %v550_v35  ;;  %v564_v39 = vmax.f32 %v559_v32, 0.0  ;;  %v565_v40 = vmax.f32 %v560_v33, 0.0 }
 0x323   : > { %v576_v57 = vadd.f32 %v575_v50, %v570_v48 }
 0x324   : > { %582 = vrot.lane.b32.xlu1 %v564_v39, %s837_s16  ;;  %584 = vrot.lane.b32.xlu0 %v565_v40, %s837_s16  ;;  %v561_v42 = vadd.f32 %v556_v37, %v533_v36  ;;  %v562_v43 = vadd.f32 %v557_v38, %v534_v41  ;;  %v571_v49 = vmul.f32 %v569_v46, %v564_v39 }
 0x325   : > { %v572_v54 = vmul.f32 %v569_v46, %v565_v40 }
 0x326   : > { %v566_v44 = vmax.f32 %v561_v42, 0.0  ;;  %v567_v45 = vmax.f32 %v562_v43, 0.0  ;;  %v577_v59 = vadd.f32 %v575_v50, %v571_v49 }
 0x327   : > { %v578_v1 = vadd.f32 %v575_v50, %v572_v54 }
 0x328   : > { %586 = vrot.lane.b32.xlu1 %v566_v44, %s837_s16  ;;  %588 = vrot.lane.b32.xlu0 %v567_v45, %s837_s16  ;;  %v573_v61 = vmul.f32 %v569_v46, %v566_v44 }
 0x32a   : > { %v579_v9 = vadd.f32 %v575_v50, %v573_v61 }
 0x392   : > { %v581_v47 = vpop.permute.xlu0 %580 }
 0x396   : > { %v583_v52 = vpop.permute.xlu1 %582  ;;  %v585_v53 = vpop.permute.xlu0 %584 }
 0x397   : > { %v594_v55 = vsel %vm590_vm6, %v581_v47, %v583_v52  ;;  %v593_v56 = vsel %vm590_vm6, %v583_v52, %v585_v53 }
 0x398   : > { %v597_v58 = vmul.f32 %v596_v51, %v594_v55  ;;  %v598_v60 = vmul.f32 %v596_v51, %v593_v56 }
 0x39a   : > { %v601_v62 = vadd.f32 %v597_v58, %v576_v57  ;;  %v602_v63 = vadd.f32 %v598_v60, %v577_v59  ;;  %v587_v0 = vpop.permute.xlu1 %586  ;;  %v589_v3 = vpop.permute.xlu0 %588 }
 0x39b   : > { %v592_v2 = vsel %vm590_vm6, %v585_v53, %v587_v0  ;;  %v591_v8 = vsel %vm590_vm6, %v587_v0, %v589_v3 }
 0x39c   : > { %v605_v4 = vmax.f32 %v601_v62, 0.0  ;;  %v606_v5 = vmax.f32 %v602_v63, 0.0  ;;  %v599_v6 = vmul.f32 %v596_v51, %v592_v2  ;;  %v600_v10 = vmul.f32 %v596_v51, %v591_v8 }
 0x39e   : > { %609 = vst [vmem:[%s277_s23] sm:$0xff] %v605_v4  ;;  %610 = vst [vmem:[%s277_s23 + $0x8] sm:$0xff] %v606_v5  ;;  %v603_v11 = vadd.f32 %v599_v6, %v578_v1  ;;  %v604_v12 = vadd.f32 %v600_v10, %v579_v9 }
 0x3a0   : > { %v607_v13 = vmax.f32 %v603_v11, 0.0  ;;  %v608_v14 = vmax.f32 %v604_v12, 0.0 }
 0x3a2   : > { %611 = vst [vmem:[%s277_s23 + $0x10] sm:$0xff] %v607_v13  ;;  %612 = vst [vmem:[%s277_s23 + $0x18] sm:$0xff] %v608_v14 }
 0x3a3 PF: > { %s16_s15 = sadd.s32 1, %s827_s15  }
 0x3a4   : > { %p13_p7 = scmp.ge.s32.totalorder %s16_s15, 5  }
 0x3a6   :  { %15 = sbr.rel (!%p13_p7) target bundleno = 2 (0x2), region = 78 }
 0x3ad   :  { %635 = vsyncpa [#allocation3], 1 }
 0x3ae   :  { %637 = vsyncpa [#allocation3 + $0x1], 1 }
 0x3af   :  { %638 = vsyncpa [#allocation5], 1 }

</bundles_post_ra>
